<compile_context>
chip_gen: v7x
topology: tpu7x:2x2x1
jax: 0.10.0
libtpu: 0.0.40
codegen_flags: <defaults>
</compile_context>

<pallas_src>
import jax
import jax.numpy as jnp
from jax import lax
from jax.experimental import pallas as pl
from jax.experimental.pallas import tpu as pltpu

LANE = 128      # TPU lane width
SUBLANE = 8     # TPU sublane width (f32)
MAX_TB = 256    # batch-tile rows per grid step for the batched forward


def _round_up(n, m):
    return ((n + m - 1) // m) * m


# --------------------------------------------------------------------------
# Parameter preparation (one-time, outside the hot path)
# --------------------------------------------------------------------------
def prepare_params(w1, b1, w2, b2):
    """PyTorch Linear layout (out, in) -> kernel layout.

    Returns (w1_aug, w2_pad, b2_pad, n_actions) where
      w1_aug : (F+1, H)   = [w1.T ; b1]   (bias folded via ones-column on x)
      w2_pad : (H, A_pad) = w2.T zero-padded to 128 lanes
      b2_pad : (1, A_pad) = b2   zero-padded to 128 lanes
    """
    H, F = w1.shape
    A = w2.shape[0]
    A_pad = _round_up(A, LANE)

    w1_aug = jnp.concatenate(
        [w1.T.astype(jnp.float32), b1.reshape(1, H).astype(jnp.float32)], axis=0
    )                                                                   # (F+1, H)
    w2_pad = jnp.zeros((H, A_pad), jnp.float32).at[:, :A].set(w2.T)     # (H, A_pad)
    b2_pad = jnp.zeros((1, A_pad), jnp.float32).at[:, :A].set(b2)       # (1, A_pad)
    return w1_aug, w2_pad, b2_pad, A


def _augment_x(x, b_pad, f):
    """Zero-pad batch rows to b_pad and append the ones column (layer-1 bias)."""
    B = x.shape[0]
    x_aug = jnp.zeros((b_pad, f + 1), jnp.float32)
    x_aug = x_aug.at[:B, :f].set(x.astype(jnp.float32))
    x_aug = x_aug.at[:B, f].set(1.0)
    return x_aug


# --------------------------------------------------------------------------
# Forward kernel (batched): q = tanh([x,1] @ W1aug) @ W2pad + b2pad
# --------------------------------------------------------------------------
def _mlp_kernel(x_ref, w1_ref, w2_ref, b2_ref, out_ref):
    h = jnp.tanh(
        jnp.dot(x_ref[...], w1_ref[...], preferred_element_type=jnp.float32)
    )
    q = jnp.dot(h, w2_ref[...], preferred_element_type=jnp.float32) + b2_ref[...]
    out_ref[...] = q.astype(out_ref.dtype)


def dqn_forward(x, params):
    """x: (B, F) f32.  Returns (B, n_actions) f32 (same semantics as Network.forward)."""
    w1_aug, w2_pad, b2_pad, A = params
    B, F = x.shape
    Fa = F + 1
    H = w1_aug.shape[1]
    A_pad = w2_pad.shape[1]

    TB = min(MAX_TB, _round_up(B, SUBLANE))   # batch tile (multiple of 8)
    B_pad = _round_up(B, TB)
    x_aug = _augment_x(x, B_pad, F)

    q_pad = pl.pallas_call(
        _mlp_kernel,
        out_shape=jax.ShapeDtypeStruct((B_pad, A_pad), jnp.float32),
        grid_spec=pl.GridSpec(
            grid=(B_pad // TB,),
            in_specs=[
                pl.BlockSpec((TB, Fa), lambda i: (i, 0)),        # x tile streams
                pl.BlockSpec((Fa, H), lambda i: (0, 0)),         # weights VMEM-resident
                pl.BlockSpec((H, A_pad), lambda i: (0, 0)),
                pl.BlockSpec((1, A_pad), lambda i: (0, 0)),
            ],
            out_specs=pl.BlockSpec((TB, A_pad), lambda i: (i, 0)),
        ),
        compiler_params=pltpu.CompilerParams(
            dimension_semantics=("parallel",),                   # v7x: 2 TCs
        ),
    )(x_aug, w1_aug, w2_pad, b2_pad)

    return q_pad[:B, :A]


# --------------------------------------------------------------------------
# Fused act kernel: forward + action-mask + argmax in one launch
# --------------------------------------------------------------------------
def _act_kernel(x_ref, w1_ref, w2_ref, b2_ref, mask_ref, q_ref, act_ref):
    h = jnp.tanh(
        jnp.dot(x_ref[...], w1_ref[...], preferred_element_type=jnp.float32)
    )
    q = jnp.dot(h, w2_ref[...], preferred_element_type=jnp.float32) + b2_ref[...]
    q_ref[...] = q.astype(q_ref.dtype)

    # Invalid actions (mask <= 0) and padded lanes -> -inf.
    # (Deliberate robustness fix vs. the original numpy `masked == 0` trick,
    #  which would also filter a *valid* action whose Q-value is exactly 0.0.)
    neg_inf = jnp.float32(-jnp.inf)
    filtered = jnp.where(mask_ref[...] > 0.0, q, neg_inf)

    # First-occurrence argmax along lanes via max + iota + min (VPU/XLU ops).
    m = jnp.max(filtered, axis=1, keepdims=True)                         # (TB, 1)
    idx = lax.broadcasted_iota(jnp.int32, filtered.shape, 1).astype(jnp.float32)
    big = jnp.float32(filtered.shape[1])
    cand = jnp.where(filtered == m, idx, big)
    act_ref[...] = jnp.min(cand, axis=1, keepdims=True).astype(act_ref.dtype)


def dqn_act(observation, action_mask, params):
    """Fused Network.act(): returns (actions (B,) int32, q_values (B, A) f32)."""
    w1_aug, w2_pad, b2_pad, A = params
    obs = jnp.atleast_2d(jnp.asarray(observation, jnp.float32))   # (B, F)
    msk = jnp.atleast_2d(jnp.asarray(action_mask, jnp.float32))   # (B, A)
    B, F = obs.shape
    Fa = F + 1
    H = w1_aug.shape[1]
    A_pad = w2_pad.shape[1]

    B_pad = _round_up(B, SUBLANE)
    x_aug = _augment_x(obs, B_pad, F)
    mask_pad = jnp.zeros((B_pad, A_pad), jnp.float32).at[:B, :A].set(msk)

    q_pad, act_pad = pl.pallas_call(
        _act_kernel,
        out_shape=(
            jax.ShapeDtypeStruct((B_pad, A_pad), jnp.float32),
            jax.ShapeDtypeStruct((B_pad, 1), jnp.int32),
        ),
        grid_spec=pl.GridSpec(
            grid=(1,),
            in_specs=[
                pl.BlockSpec((B_pad, Fa), lambda i: (0, 0)),
                pl.BlockSpec((Fa, H), lambda i: (0, 0)),
                pl.BlockSpec((H, A_pad), lambda i: (0, 0)),
                pl.BlockSpec((1, A_pad), lambda i: (0, 0)),
                pl.BlockSpec((B_pad, A_pad), lambda i: (0, 0)),
            ],
            out_specs=(
                pl.BlockSpec((B_pad, A_pad), lambda i: (0, 0)),
                pl.BlockSpec((B_pad, 1), lambda i: (0, 0)),
            ),
        ),
        compiler_params=pltpu.CompilerParams(
            dimension_semantics=("arbitrary",),
        ),
    )(x_aug, w1_aug, w2_pad, b2_pad, mask_pad)

    return act_pad[:B, 0], q_pad[:B, :A]


# --------------------------------------------------------------------------
# References (pure JAX)
# --------------------------------------------------------------------------
def reference_forward(x, w1, b1, w2, b2):
    h = jnp.tanh(x @ w1.T + b1)
    return h @ w2.T + b2


def reference_act(x, w1, b1, w2, b2, mask):
    q = reference_forward(x, w1, b1, w2, b2)
    filtered = jnp.where(mask > 0, q, -jnp.inf)
    return jnp.argmax(filtered, axis=1).astype(jnp.int32), q


if __name__ == "__main__":
    key = jax.random.PRNGKey(0)
    k_x, k_w1, k_b1, k_w2, k_b2, k_xb = jax.random.split(key, 6)

    # Shapes consistent with the module: flat 16-feature observation,
    # hidden = 64 (fixed by the module), 4 discrete actions, batch = 2.
    batch = 2
    in_features = 16
    hidden = 64
    n_actions = 4

    x = jax.random.normal(k_x, (batch, in_features), dtype=jnp.float32)

    # PyTorch Linear stores weight as (out, in).
    w1 = jax.random.normal(k_w1, (hidden, in_features), dtype=jnp.float32) * 0.1
    b1 = jax.random.normal(k_b1, (hidden,), dtype=jnp.float32) * 0.1
    w2 = jax.random.normal(k_w2, (n_actions, hidden), dtype=jnp.float32) * 0.1
    b2 = jax.random.normal(k_b2, (n_actions,), dtype=jnp.float32) * 0.1

    params = prepare_params(w1, b1, w2, b2)

    # ---- forward pass (act-sized batch) ----
    q_pallas = jax.block_until_ready(dqn_forward(x, params))
    q_ref = reference_forward(x, w1, b1, w2, b2)
    assert q_pallas.shape == (batch, n_actions)
    assert jnp.allclose(q_pallas, q_ref, atol=1e-5, rtol=1e-5)

    # ---- forward pass (small batched path, exercises batch tiling) ----
    xb = jax.random.normal(k_xb, (32, in_features), dtype=jnp.float32)
    qb_pallas = jax.block_until_ready(dqn_forward(xb, params))
    qb_ref = reference_forward(xb, w1, b1, w2, b2)
    assert jnp.allclose(qb_pallas, qb_ref, atol=1e-5, rtol=1e-5)

    # ---- fused act(): forward + mask + argmax in a single kernel launch ----
    action_mask = jnp.array([[1, 0, 1, 1], [1, 1, 0, 1]], dtype=jnp.float32)
    actions, q_act = dqn_act(x, action_mask, params)
    actions = jax.block_until_ready(actions)
    act_ref, q_act_ref = reference_act(x, w1, b1, w2, b2, action_mask)
    assert jnp.allclose(q_act, q_act_ref, atol=1e-5, rtol=1e-5)
    assert jnp.array_equal(actions, act_ref)

    print("KERNEL_OK")
</pallas_src>

<mosaic_0001>
module attributes {stable_mosaic.version = 11 : i64} {
  func.func @_mlp_kernel(%arg0: i32, %arg1: memref<8x17xf32, #tpu.memory_space<vmem>>, %arg2: memref<17x64xf32, #tpu.memory_space<vmem>>, %arg3: memref<64x128xf32, #tpu.memory_space<vmem>>, %arg4: memref<1x128xf32, #tpu.memory_space<vmem>>, %arg5: memref<8x128xf32, #tpu.memory_space<vmem>>) attributes {dimension_semantics = [#tpu.dimension_semantics<parallel>], iteration_bounds = array<i64: 1>, scalar_prefetch = 0 : i64, scratch_operands = 0 : i64, tpu.core_type = #tpu.core_type<tc>, window_params = [{transform_indices = @transform_0, window_bounds = array<i64: 8, 17>}, {pipeline_mode = #tpu.pipeline_mode<synchronous>, transform_indices = @transform_1, window_bounds = array<i64: 17, 64>}, {pipeline_mode = #tpu.pipeline_mode<synchronous>, transform_indices = @transform_2, window_bounds = array<i64: 64, 128>}, {pipeline_mode = #tpu.pipeline_mode<synchronous>, transform_indices = @transform_3, window_bounds = array<i64: 1, 128>}, {transform_indices = @transform_4, window_bounds = array<i64: 8, 128>}]} {
    %c0 = arith.constant 0 : index
    %c0_0 = arith.constant 0 : index
    %0 = vector.load %arg1[%c0, %c0_0] : memref<8x17xf32, #tpu.memory_space<vmem>>, vector<8x17xf32>
    %c0_1 = arith.constant 0 : index
    %c0_2 = arith.constant 0 : index
    %1 = vector.load %arg2[%c0_1, %c0_2] : memref<17x64xf32, #tpu.memory_space<vmem>>, vector<17x64xf32>
    %cst = arith.constant dense<0.000000e+00> : vector<8x64xf32>
    %2 = tpu.matmul %0, %1, %cst {dimension_numbers = #tpu.dot_dimension_numbers<[1], [0], [0], [1], [0, 0, 1, 1], [], []>} : vector<8x17xf32>, vector<17x64xf32>, vector<8x64xf32> -> vector<8x64xf32>
    %3 = math.tanh %2 : vector<8x64xf32>
    %c0_3 = arith.constant 0 : index
    %c0_4 = arith.constant 0 : index
    %4 = vector.load %arg3[%c0_3, %c0_4] : memref<64x128xf32, #tpu.memory_space<vmem>>, vector<64x128xf32>
    %cst_5 = arith.constant dense<0.000000e+00> : vector<8x128xf32>
    %5 = tpu.matmul %3, %4, %cst_5 {dimension_numbers = #tpu.dot_dimension_numbers<[1], [0], [0], [1], [0, 0, 1, 1], [], []>} : vector<8x64xf32>, vector<64x128xf32>, vector<8x128xf32> -> vector<8x128xf32>
    %c0_6 = arith.constant 0 : index
    %c0_7 = arith.constant 0 : index
    %6 = vector.load %arg4[%c0_6, %c0_7] : memref<1x128xf32, #tpu.memory_space<vmem>>, vector<1x128xf32>
    %7 = vector.broadcast %6 : vector<1x128xf32> to vector<8x128xf32>
    %8 = arith.addf %5, %7 : vector<8x128xf32>
    %c0_8 = arith.constant 0 : index
    %c0_9 = arith.constant 0 : index
    %9 = vector.load %arg5[%c0_8, %c0_9] : memref<8x128xf32, #tpu.memory_space<vmem>>, vector<8x128xf32>
    tpu.vector_store %arg5[%c0_8, %c0_9], %8 {strides = array<i32>} : memref<8x128xf32, #tpu.memory_space<vmem>>, vector<8x128xf32>,
    return
  }
  func.func @transform_0(%arg0: i32) -> (i32, i32) {
    %c0_i32 = arith.constant 0 : i32
    %c0_i32_0 = arith.constant 0 : i32
    return %arg0, %c0_i32 : i32, i32
  }
  func.func @transform_1(%arg0: i32) -> (i32, i32) {
    %c0_i32 = arith.constant 0 : i32
    %c0_i32_0 = arith.constant 0 : i32
    %c0_i32_1 = arith.constant 0 : i32
    return %c0_i32, %c0_i32_0 : i32, i32
  }
  func.func @transform_2(%arg0: i32) -> (i32, i32) {
    %c0_i32 = arith.constant 0 : i32
    %c0_i32_0 = arith.constant 0 : i32
    %c0_i32_1 = arith.constant 0 : i32
    return %c0_i32, %c0_i32_0 : i32, i32
  }
  func.func @transform_3(%arg0: i32) -> (i32, i32) {
    %c0_i32 = arith.constant 0 : i32
    %c0_i32_0 = arith.constant 0 : i32
    %c0_i32_1 = arith.constant 0 : i32
    return %c0_i32, %c0_i32_0 : i32, i32
  }
  func.func @transform_4(%arg0: i32) -> (i32, i32) {
    %c0_i32 = arith.constant 0 : i32
    %c0_i32_0 = arith.constant 0 : i32
    return %arg0, %c0_i32 : i32, i32
  }
}

</mosaic_0001>

<bundles_post_ra>
// kernel: tpu_custom_call.1
= control target key start
LH: loop header
LB: loop body
LE: loop exit
PB: predicated region body
PF: predicated region fallthrough
CT: control target
= control target key end

     0   :  { %9 = vsyncpa [#allocation3], 0  ;;  %s502_s0 = inlined_call_operand.hbm [shape: f32[8,17], index: 0, kind: input, shape index: {}]   ;;  %s503_s1 = inlined_call_operand.hbm [shape: f32[17,64], index: 1, kind: input, shape index: {}]   ;;  %s504_s2 = inlined_call_operand.hbm [shape: f32[64,128], index: 2, kind: input, shape index: {}]   ;;  %s505_s3 = inlined_call_operand.vmem [shape: f32[1,128], index: 3, kind: input, shape index: {}]   ;;  %s506_s4 = inlined_call_operand.hbm [shape: f32[8,128], index: 4, kind: output, shape index: {}]  }
   0x1   :  { %10 = vsyncpa [#allocation6], 0 }
   0x2   :  { %11 = vsyncpa [#allocation4], 0  ;;  %s411_s15 = smov [#allocation5]   ;;  %s317_s19 = scalar_lea.hbm %s503_s1, 384 }
   0x3   :  { %s27_s16 = sshll.u32 %s411_s15, 4  ;;  %p318_p0 = scmp.ne.s32.totalorder %s503_s1, %s317_s19  ;;  %s28_s16 = int_to_ptr.vmem [resolvable:$true] %s27_s16 }
   0x4   :  { %p321_p1 = scmp.lt.u32.totalorder %s317_s19, %s503_s1 }
   0x6   :  { %p323_p2 = pnand %p321_p1, %p318_p0 }
   0x8   :  { %326 = shalt.err (!%p323_p2)
}
   0x9   :  { %s327_s24 = scalar_lea.vmem %s28_s16, 384  ;;  %p332_p4 = scmp.lt.s32.totalorder %s28_s16, %s28_s16 }
   0xa   :  { %p328_p3 = scmp.ne.s32.totalorder %s28_s16, %s327_s24  ;;  %p333_p5 = scmp.lt.s32.totalorder %s327_s24, %s327_s24 }
   0xc   :  { %p334_p6 = por %p333_p5, %p332_p4 }
   0xe   :  { %p335_p7 = pnand %p334_p6, %p328_p3 }
  0x10   :  { %338 = shalt.err (!%p335_p7)
}
  0x11   :  { %s412_s25 = smov 128   ;;  %s413_s26 = smov 8  }
  0x12   :  { %33 = dma.hbm_to_vmem [thread:$0]  %s503_s1, 384, %s28_s16, [#allocation6], %s412_s25, %s412_s25, %s413_s26  }
  0x13   :  { %s414_s29 = smov [#allocation2]   ;;  %s415_s5 = smov [#allocation7]  }
  0x14   :  { %s18_s30 = sshll.u32 %s414_s29, 4  ;;  %s39_s6 = sshll.u32 %s415_s5, 4  ;;  %s19_s30 = int_to_ptr.vmem [resolvable:$true] %s18_s30  ;;  %s40_s6 = int_to_ptr.vmem [resolvable:$true] %s39_s6 }
  0x15   :  { %s339_s9 = scalar_lea.hbm %s502_s0, 128 }
  0x16   :  { %p340_p8 = scmp.ne.s32.totalorder %s502_s0, %s339_s9  ;;  %p343_p9 = scmp.lt.u32.totalorder %s339_s9, %s502_s0 }
  0x18   :  { %p345_p10 = pnand %p343_p9, %p340_p8 }
  0x1a   :  { %348 = shalt.err (!%p345_p10)
}
  0x1b   :  { %s349_s1 = scalar_lea.vmem %s19_s30, 128  ;;  %p354_p12 = scmp.lt.s32.totalorder %s19_s30, %s19_s30 }
  0x1c   :  { %p350_p11 = scmp.ne.s32.totalorder %s19_s30, %s349_s1  ;;  %p355_p13 = scmp.lt.s32.totalorder %s349_s1, %s349_s1 }
  0x1e   :  { %p356_p0 = por %p355_p13, %p354_p12 }
  0x20   :  { %p357_p1 = pnand %p356_p0, %p350_p11 }
  0x22   :  { %360 = shalt.err (!%p357_p1)
}
  0x23   :  { %21 = dma.hbm_to_vmem [thread:$0]  %s502_s0, 128, %s19_s30, [#allocation3]  }
  0x24   :  { %s361_s18 = scalar_lea.hbm %s504_s2, 1024 }
  0x25   :  { %p362_p2 = scmp.ne.s32.totalorder %s504_s2, %s361_s18  ;;  %p365_p3 = scmp.lt.u32.totalorder %s361_s18, %s504_s2 }
  0x27   :  { %p367_p4 = pnand %p365_p3, %p362_p2 }
  0x29   :  { %370 = shalt.err (!%p367_p4)
}
  0x2a   :  { %s371_s23 = scalar_lea.vmem %s40_s6, 1024  ;;  %p376_p6 = scmp.lt.s32.totalorder %s40_s6, %s40_s6 }
  0x2b   :  { %p372_p5 = scmp.ne.s32.totalorder %s40_s6, %s371_s23  ;;  %p377_p7 = scmp.lt.s32.totalorder %s371_s23, %s371_s23 }
  0x2d   :  { %p378_p8 = por %p377_p7, %p376_p6 }
  0x2f   :  { %p379_p9 = pnand %p378_p8, %p372_p5 }
  0x31   :  { %382 = shalt.err (!%p379_p9)
}
  0x32   :  { %45 = dma.hbm_to_vmem [thread:$0]  %s504_s2, 1024, %s40_s6, [#allocation6], %s412_s25, %s412_s25, %s413_s26  }
  0x33   :  { %405 = dma.done.wait [#allocation3], 128  }
  0x34   :  { %406 = vsyncadd [#allocation3], 4294967168 }
  0x35   :  { %407 = dma.done.wait [#allocation6], 1408  }
  0x36   :  { %408 = vsyncadd [#allocation6], 4294965888  ;;  %v416_v0 = vmov 0.0|0.0   ;;  %vm417_vm0 = vmmov 0   ;;  %v418_v1 = vmov 0.0   ;;  %v58_v2 = vld [vmem:[#allocation5] sm:$0xff] }
  0x37   :  { %291 = vmatprep.subr.bf16.mxu0 %v416_v0  ;;  %269 = vmatprep.mubr.msk.f32.mxu0 %vm417_vm0, %v418_v1  ;;  %v59_v3 = vld [vmem:[#allocation5 + $0x8] sm:$0xff]  ;;  %v140_v5 = vld [vmem:[#allocation7] sm:$0xff]  ;;  %v141_v6 = vld [vmem:[#allocation7 + $0x8] sm:$0xff]  ;;  %vm65_vm1 = vcmask 1040384   ;;  %vm61_vm2 = vcmask 138240   ;;  %vm155_vm3 = vcmask 523264  }
  0x38   :  { %294 = vmatprep.subr.bf16.mxu1 %v416_v0  ;;  %288 = vmatprep.mubr.msk.f32.mxu1 %vm417_vm0, %v418_v1  ;;  %v292_v4 = vpack.c.bf16 %v59_v3, %v58_v2  ;;  %v295_v7 = vpack.c.bf16 %v141_v6, %v140_v5  ;;  %v60_v8 = vld [vmem:[#allocation5 + $0x10] sm:$0x1]  ;;  %v57_v9 = vld [vmem:[#allocation2] sm:$0xff]  ;;  %v142_v10 = vld [vmem:[#allocation7 + $0x10] sm:$0xff]  ;;  %s419_s26 = smov [#allocation8]  }
  0x39   :  { %v143_v11 = vld [vmem:[#allocation7 + $0x18] sm:$0xff]  ;;  %v144_v13 = vld [vmem:[#allocation7 + $0x20] sm:$0xff]  ;;  %v145_v14 = vld [vmem:[#allocation7 + $0x28] sm:$0xff]  ;;  %s236_s27 = sshll.u32 %s419_s26, 4  ;;  %s237_s27 = int_to_ptr.vmem [resolvable:$true] %s236_s27 }
  0x3a   :  { %293 = vmatpush3.bf16.msra.mxu0 %v292_v4  ;;  %296 = vmatpush3.bf16.msra.mxu1 %v295_v7  ;;  %v298_v12 = vpack.c.bf16 %v143_v11, %v142_v10  ;;  %v301_v15 = vpack.c.bf16 %v145_v14, %v144_v13  ;;  %v146_v16 = vld [vmem:[#allocation7 + $0x30] sm:$0xff]  ;;  %v147_v17 = vld [vmem:[#allocation7 + $0x38] sm:$0xff]  ;;  %v248_v22 = vld [vmem:[%s505_s3] ss:$0 sm:$0xff]  ;;  %s383_s28 = scalar_lea.vmem %s237_s27, 128  ;;  %p388_p11 = scmp.lt.s32.totalorder %s237_s27, %s237_s27 }
  0x3b   :  { %267 = vmatprep.subr.mxu0 %v418_v1  ;;  %297 = vmatprep.subr.bf16.mxu1 %v416_v0  ;;  %v304_v18 = vpack.c.bf16 %v147_v17, %v146_v16  ;;  %p384_p10 = scmp.ne.s32.totalorder %s237_s27, %s383_s28  ;;  %p389_p12 = scmp.lt.s32.totalorder %s383_s28, %s383_s28 }
  0x3d   :  { %p390_p13 = por %p389_p12, %p388_p11 }
  0x3e   :  { %268 = vmatpush3.msk.msra.mxu0 %vm65_vm1, %v60_v8  ;;  %299 = vmatpush3.bf16.msra.mxu1 %v298_v12 }
  0x3f   :  { %270 = vmatmul.mubr.msk.f32.vlgmr.msra.gmra.mrb[0].mxu0 %vm61_vm2, %v57_v9  ;;  %300 = vmatprep.subr.bf16.mxu1 %v416_v0  ;;  %p391_p0 = pnand %p390_p13, %p384_p10 }
  0x42   :  { %302 = vmatpush3.bf16.msra.mxu1 %v301_v15 }
  0x43   :  { %303 = vmatprep.subr.bf16.mxu1 %v416_v0 }
  0x46   :  { %305 = vmatpush3.bf16.msra.mxu1 %v304_v18 }
 0x112   :  { %v135_v19 = vpop.f32.mrb[0].mxu0 }
 0x113   :  { %315 = vtanh.f32 %v135_v19  ;;  %v271_v20 = vpop.f32.mrb[1].mxu0 }
 0x11d   :  { %v316_v21 = vpop.eup %315 }
 0x11e   :  { %289 = vmatmul.mubr.msk.f32.vlgmr.msra.gmra.mrb[0].mxu1 %vm155_vm3, %v316_v21 }
 0x1f1   :  { %v225_v23 = vpop.f32.mrb[0].mxu1 }
 0x1f2   :  { %v226_v24 = vadd.f32 %v248_v22, %v225_v23  ;;  %v290_v25 = vpop.f32.mrb[1].mxu1 }
 0x1f4   :  { %229 = vst [vmem:[#allocation8] sm:$0xff] %v226_v24 }
 0x1f5   :  { %394 = shalt.err (!%p391_p0)
}
 0x1f6   :  { %s395_s5 = scalar_lea.hbm %s506_s4, 128 }
 0x1f7   :  { %p396_p1 = scmp.ne.s32.totalorder %s506_s4, %s395_s5  ;;  %p399_p2 = scmp.lt.u32.totalorder %s395_s5, %s506_s4 }
 0x1f9   :  { %p401_p3 = pnand %p399_p2, %p396_p1 }
 0x1fb   :  { %404 = shalt.err (!%p401_p3)
}
 0x1fc   :  { %239 = dma.vmem_to_hbm [thread:$0]  %s237_s27, 128, %s506_s4, [#allocation4]  }
 0x1fd   :  { %409 = dma.done.wait [#allocation4], 128  }
 0x1fe   :  { %410 = vsyncadd [#allocation4], 4294967168 }
 0x1ff   :  { %243 = vsyncpa [#allocation3], 1 }
 0x200   :  { %244 = vsyncpa [#allocation6], 1 }
 0x201   :  { %245 = vsyncpa [#allocation4], 1 }

</bundles_post_ra>
